<compile_context>
chip_gen: v5e
topology: v5e:2x2
jax: 0.10.0
libtpu: 0.0.40
codegen_flags: <defaults>
</compile_context>

<pallas_src>
import jax
import jax.numpy as jnp
from jax.experimental import pallas as pl
from jax.experimental.pallas import tpu as pltpu


# ----------------------------- Pallas kernel -------------------------------

def _rmsnorm_kernel(x_ref, g_ref, o_ref):
    # x_ref: (1, C, TILE_HW)   g_ref: (C, 1)  (already folded with sqrt(C))
    xf = x_ref[0].astype(jnp.float32)                       # (C, TILE_HW)
    ssq = jnp.sum(xf * xf, axis=0, keepdims=True)           # (1, TILE_HW)
    # 1 / max(||x||_2, 1e-12)  ==  rsqrt(max(ssq, 1e-24)); rsqrt issues on EUP.
    inv = jax.lax.rsqrt(jnp.maximum(ssq, 1e-24))
    # Re-read the ref for the second pass instead of reusing the materialized
    # f32 upcast -> Mosaic doesn't have to hold a tile-sized f32 temporary
    # across the sublane reduce (matters most for bf16 inputs / v7x VMEM).
    o_ref[0] = (x_ref[0].astype(jnp.float32) * inv * g_ref[...]).astype(o_ref.dtype)


# ------------------------------- wrapper ------------------------------------

def _sublane_pack(itemsize):
    # sublane packing factor: f32 -> 8, bf16/f16 -> 16, int8/fp8 -> 32
    return {4: 8, 2: 16, 1: 32}.get(itemsize, 8)


def _pick_tile_hw(hw, c, itemsize, batch, *, max_block_bytes=2 << 20,
                  min_grid_steps=8):
    """Pick a 128-multiple lane tile.

    Constraints:
      * per-block footprint (with C padded to the sublane pack) <= 2 MiB, so
        double-buffered input + output blocks stay well inside the scoped VMEM
        of every generation (v5e 16 MiB default, v7x 64 MiB physical);
      * enough total grid steps (>= min_grid_steps) so BlockSpec pipelining has
        something to overlap and v7x can shard across its 2 TensorCores.
    """
    pack = _sublane_pack(itemsize)
    c_pad = ((c + pack - 1) // pack) * pack

    # VMEM-budget cap (physically padded sublanes).
    budget_lanes = (max_block_bytes // (itemsize * c_pad)) // 128 * 128

    # Minimum-steps cap: batch * ceil(hw / tile) >= min_grid_steps.
    steps_lanes = ((hw * batch) // min_grid_steps) // 128 * 128

    hw_rounded = pl.cdiv(hw, 128) * 128
    tile = min(budget_lanes, steps_lanes, hw_rounded)
    return max(tile, 128)


def rmsnorm_forward(x_nchw, g):
    """RMSNorm.forward.  x_nchw: (B, C, H, W);  g: (C,) or (1, C, 1, 1)."""
    B, C, H, W = x_nchw.shape
    HW = H * W
    itemsize = jnp.dtype(x_nchw.dtype).itemsize
    tile = _pick_tile_hw(HW, C, itemsize, B)
    grid = (B, pl.cdiv(HW, tile))

    x_flat = x_nchw.reshape(B, C, HW)                       # free reshape (NCHW)
    g_fold = (jnp.asarray(g, jnp.float32).reshape(C, 1) * (C ** 0.5))

    # Explicit scoped-VMEM budget: 2x double-buffered (in + out) blocks,
    # internal f32 temporaries, resident gain, plus margin.  Clamp so it is
    # valid on v5e (128 MiB) and v7x (64 MiB physical) alike.
    pack = _sublane_pack(itemsize)
    c_pad = ((C + pack - 1) // pack) * pack
    block_bytes = c_pad * tile * itemsize
    vmem_need = 4 * block_bytes + 2 * c_pad * tile * 4 + (1 << 20)
    vmem_limit = int(min(max(vmem_need, 16 << 20), 48 << 20))

    cost = pl.CostEstimate(
        flops=4 * B * C * HW,
        transcendentals=B * HW,
        bytes_accessed=2 * B * C * HW * itemsize + C * 4,
    )

    out_flat = pl.pallas_call(
        _rmsnorm_kernel,
        out_shape=jax.ShapeDtypeStruct((B, C, HW), x_nchw.dtype),
        grid=grid,
        in_specs=[
            pl.BlockSpec((1, C, tile), lambda b, t: (b, 0, t)),
            pl.BlockSpec((C, 1), lambda b, t: (0, 0)),      # resident constant
        ],
        out_specs=pl.BlockSpec((1, C, tile), lambda b, t: (b, 0, t)),
        compiler_params=pltpu.CompilerParams(
            dimension_semantics=("parallel", "parallel"),
            vmem_limit_bytes=vmem_limit),
        cost_estimate=cost,
    )(x_flat, g_fold)

    return out_flat.reshape(B, C, H, W)

    # TODO(synk): optional small-C sublane packing ((C, HW) -> (C*k, HW/k) with a
    # strided sublane reduction) skipped for robustness; win is VMEM-side only.


# --------------------------- pure-JAX reference -----------------------------

def _ref_rmsnorm(x, g):
    nrm = jnp.sqrt(jnp.sum(x * x, axis=1, keepdims=True))
    return x / jnp.maximum(nrm, 1e-12) * g.reshape(1, -1, 1, 1) * (x.shape[1] ** 0.5)


# --------------------------------- main -------------------------------------

if __name__ == "__main__":
    B, C, H, W = 2, 4, 16, 16

    key = jax.random.PRNGKey(0)
    kx, kg = jax.random.split(key)

    x = jax.random.normal(kx, (B, C, H, W), jnp.float32)
    # module initializes g to ones; perturb so the gain path is actually tested
    g = 1.0 + 0.1 * jax.random.normal(kg, (C,), jnp.float32)

    out = jax.block_until_ready(rmsnorm_forward(x, g))
    ref = jax.block_until_ready(_ref_rmsnorm(x, g))

    assert out.shape == (B, C, H, W)
    assert jnp.allclose(out, ref, atol=1e-4, rtol=1e-4), float(
        jnp.max(jnp.abs(out - ref)))

    print("KERNEL_OK")
</pallas_src>

<mosaic_0001>
module attributes {stable_mosaic.version = 11 : i64} {
  func.func @_rmsnorm_kernel(%arg0: i32, %arg1: i32, %arg2: memref<1x4x128xf32, #tpu.memory_space<vmem>>, %arg3: memref<4x1xf32, #tpu.memory_space<vmem>>, %arg4: memref<1x4x128xf32, #tpu.memory_space<vmem>>) attributes {dimension_semantics = [#tpu.dimension_semantics<parallel>, #tpu.dimension_semantics<parallel>], iteration_bounds = array<i64: 2, 2>, scalar_prefetch = 0 : i64, scratch_operands = 0 : i64, tpu.core_type = #tpu.core_type<tc>, window_params = [{transform_indices = @transform_0, window_bounds = array<i64: 1, 4, 128>}, {pipeline_mode = #tpu.pipeline_mode<synchronous>, transform_indices = @transform_1, window_bounds = array<i64: 4, 1>}, {transform_indices = @transform_2, window_bounds = array<i64: 1, 4, 128>}]} {
    %c0 = arith.constant 0 : index
    %c0_0 = arith.constant 0 : index
    %c0_1 = arith.constant 0 : index
    %0 = vector.load %arg2[%c0, %c0_0, %c0_1] : memref<1x4x128xf32, #tpu.memory_space<vmem>>, vector<1x4x128xf32>
    %1 = vector.shape_cast %0 : vector<1x4x128xf32> to vector<4x128xf32>
    %2 = arith.mulf %1, %1 : vector<4x128xf32>
    %cst = arith.constant dense<0.000000e+00> : vector<128xf32>
    %3 = vector.multi_reduction <add>, %2, %cst [0] : vector<4x128xf32> to vector<128xf32>
    %4 = vector.shape_cast %3 : vector<128xf32> to vector<1x128xf32>
    %cst_2 = arith.constant 1.000000e-24 : f32
    %5 = vector.broadcast %cst_2 : f32 to vector<1x128xf32>
    %6 = arith.maximumf %4, %5 : vector<1x128xf32>
    %7 = math.rsqrt %6 : vector<1x128xf32>
    %c0_3 = arith.constant 0 : index
    %c0_4 = arith.constant 0 : index
    %c0_5 = arith.constant 0 : index
    %8 = vector.load %arg2[%c0_3, %c0_4, %c0_5] : memref<1x4x128xf32, #tpu.memory_space<vmem>>, vector<1x4x128xf32>
    %9 = vector.shape_cast %8 : vector<1x4x128xf32> to vector<4x128xf32>
    %10 = vector.broadcast %7 : vector<1x128xf32> to vector<4x128xf32>
    %11 = arith.mulf %9, %10 : vector<4x128xf32>
    %c0_6 = arith.constant 0 : index
    %c0_7 = arith.constant 0 : index
    %12 = vector.load %arg3[%c0_6, %c0_7] : memref<4x1xf32, #tpu.memory_space<vmem>>, vector<4x1xf32>
    %13 = vector.broadcast %12 : vector<4x1xf32> to vector<4x128xf32>
    %14 = arith.mulf %11, %13 : vector<4x128xf32>
    %c0_8 = arith.constant 0 : index
    %c0_9 = arith.constant 0 : index
    %c0_10 = arith.constant 0 : index
    %15 = vector.load %arg4[%c0_8, %c0_9, %c0_10] : memref<1x4x128xf32, #tpu.memory_space<vmem>>, vector<1x4x128xf32>
    %16 = vector.shape_cast %15 : vector<1x4x128xf32> to vector<4x128xf32>
    %17 = vector.shape_cast %14 : vector<4x128xf32> to vector<1x4x128xf32>
    tpu.vector_store %arg4[%c0_8, %c0_9, %c0_10], %17 {strides = array<i32>} : memref<1x4x128xf32, #tpu.memory_space<vmem>>, vector<1x4x128xf32>,
    return
  }
  func.func @transform_0(%arg0: i32, %arg1: i32) -> (i32, i32, i32) {
    %c0_i32 = arith.constant 0 : i32
    %c0_i32_0 = arith.constant 0 : i32
    return %arg0, %c0_i32, %arg1 : i32, i32, i32
  }
  func.func @transform_1(%arg0: i32, %arg1: i32) -> (i32, i32) {
    %c0_i32 = arith.constant 0 : i32
    %c0_i32_0 = arith.constant 0 : i32
    %c0_i32_1 = arith.constant 0 : i32
    return %c0_i32, %c0_i32_0 : i32, i32
  }
  func.func @transform_2(%arg0: i32, %arg1: i32) -> (i32, i32, i32) {
    %c0_i32 = arith.constant 0 : i32
    %c0_i32_0 = arith.constant 0 : i32
    return %arg0, %c0_i32, %arg1 : i32, i32, i32
  }
}

</mosaic_0001>

<bundles_post_ra>
// kernel: tpu_custom_call.1
= control target key start
LH: loop header
LB: loop body
LE: loop exit
PB: predicated region body
PF: predicated region fallthrough
CT: control target
= control target key end

     0   :  { %7 = vsyncpa [#allocation3], 0  ;;  %s704_s0 = inlined_call_operand.hbm [shape: f32[2,4,256], index: 0, kind: input, shape index: {}]   ;;  %s705_s1 = inlined_call_operand.vmem [shape: f32[4,1], index: 1, kind: input, shape index: {}]   ;;  %s706_s2 = inlined_call_operand.hbm [shape: f32[2,4,256], index: 2, kind: output, shape index: {}]  }
   0x1   :  { %9 = vsyncpa [#allocation3 + $0x1], 0 }
   0x2   :  { %10 = vsyncpa [#allocation4], 0 }
   0x3   :  { %12 = vsyncpa [#allocation4 + $0x1], 0  ;;  %s555_s9 = smov 0   ;;  %s557_s10 = smov 0  }
   0x4   :  { %s559_s11 = smov 0   ;;  %s561_s12 = smov 0  }
   0x5   :  { %s563_s13 = smov 0   ;;  %s565_s14 = smov 0  }
   0x6   :  { %s567_s15 = smov 0   ;;  %s569_s16 = smov 0  }
   0x7 LB: > { %s312_s17 = sadd.s32 4294967295, %s537_s16   ;;  %s313_s18 = sadd.s32 4294967294, %s537_s16   ;;  %s537_s16 = sphi %s569_s16, %s18_s16   ;;  %s533_s15 = sphi %s567_s15, %s717_s15   ;;  %s529_s14 = sphi %s565_s14, %s716_s14   ;;  %s525_s13 = sphi %s563_s13, %s715_s13   ;;  %s521_s12 = sphi %s561_s12, %s714_s12   ;;  %s517_s11 = sphi %s559_s11, %s713_s11   ;;  %s513_s10 = sphi %s557_s10, %s712_s10   ;;  %s509_s9 = sphi %s555_s9, %s711_s9  }
   0x8   : > { %s27_s19 = sadd.s32 1, %s529_s14  ;;  %s30_s20 = sadd.s32 1, %s533_s15 }
   0x9   : > { %p28_p0 = scmp.ge.s32.totalorder %s27_s19, 2  ;;  %s39_s21 = sadd.s32 1, %s517_s11 }
   0xa   : > { %p46_p1 = scmp.ne.s32.totalorder %s517_s11, %s513_s10  ;;  %p47_p2 = scmp.eq.s32.totalorder %s537_s16, 0 }
   0xb   : > { %s719_s19 = smov (%p28_p0, %s27_s19), 0  ;;  %s721_s20 = smov (!%p28_p0, %s30_s20), %s533_s15 }
   0xc   : > { %s35_s22 = ssub.s32 %s529_s14, %s719_s19  ;;  %p608_p3 = por %p47_p2, %p46_p1 }
   0xd   : > { %p32_p4 = scmp.ge.s32.totalorder %s721_s20, 2  ;;  %p52_p5 = scmp.ne.s32.totalorder %s513_s10, %s509_s9 }
   0xe   : > { %p53_p6 = scmp.eq.s32.totalorder %s312_s17, 0  ;;  %p99_p7 = scmp.eq.s32.totalorder %s312_s17, 3 }
   0xf   : > { %s723_s20 = smov (%p32_p4, %s721_s20), 0  ;;  %p105_p10 = scmp.eq.s32.totalorder %s313_s18, 3 }
  0x10   : > { %p616_p8 = por %p53_p6, %p52_p5  ;;  %p620_p9 = por %p99_p7, %p46_p1 }
  0x11   : > { %s34_s26 = ssub.s32 %s533_s15, %s723_s20  ;;  %p626_p12 = por %p105_p10, %p52_p5 }
  0x12   : > { %s36_s27 = sor.u32 %s35_s22, %s34_s26  ;;  %p339_p13 = scmp.lt.s32.totalorder %s537_s16, 4 }
  0x13   : > { %p37_p11 = scmp.eq.s32.totalorder %s36_s27, 0  ;;  %s128_s29 = sand.u32 1, %s517_s11  }
  0x14   : > { %s316_s3 = sshll.u32 %s128_s29, 2  ;;  %s317_s4 = sshll.u32 %s533_s15, 1 }
  0x15   : > { %s633_s30 = scalar_select %p37_p11, %s517_s11, %s39_s21  }
  0x16   : > { %s136_s5 = sadd.s32 %s529_s14, %s317_s4  ;;  %s132_s6 = scalar_lea.vmem [#allocation2], %s316_s3 }
  0x17   : > { %s142_s7 = sshll.u32 %s132_s6, 4  ;;  %s318_s8 = sshll.u32 %s136_s5, 2  ;;  %s143_s7 = int_to_ptr.vmem [resolvable:$true] %s142_s7 }
  0x18   : > { %s138_s22 = scalar_lea.hbm %s704_s0, %s318_s8  ;;  %p332_p0 = pnand %p339_p13, %p608_p3 }
  0x19   : > { %s140_s26 = sshll.u32 %s138_s22, 4  ;;  %p319_p1 = scmp.ge.s32.totalorder %s537_s16, 1  ;;  %s141_s26 = int_to_ptr.hbm [resolvable:$true] %s140_s26 }
  0x1a   : > { %s129_s27 = scalar_lea.sflag [#allocation3], %s128_s29  ;;  %p147_p2 = scmp.lt.s32.totalorder %s537_s16, 5 }
  0x1b   : > { %334 = dma.hbm_to_vmem [thread:$0]  (!%p332_p0), %s141_s26, 64, %s143_s7, %s129_s27  }
  0x1c   : > { %p148_p4 = pnand %p319_p1, %p147_p2 }
  0x1d   : > { %s645_s21 = sand.u32 (!%p148_p4), 1, %s513_s10  }
  0x1e   : > { %151 = sbr.rel (%p148_p4) target bundleno = 158 (0x9e), region = 28  ;;  %s320_s3 = sshll.u32 (!%p148_p4), %s645_s21, 2 }
  0x1f   : > { %s154_s4 = scalar_lea.sflag (!%p148_p4), [#allocation3], %s645_s21  ;;  %s157_s23 = scalar_lea.vmem (!%p148_p4), [#allocation2], %s320_s3 }
  0x23   : > { %500 = dma.done.wait (%p616_p8), %s154_s4, 64  }
  0x24   : > { %502 = vsyncadd (%p616_p8), %s154_s4, 4294967232  ;;  %v539_v0 = vmov 0   ;;  %v201_v1 = vld [vmem:[%s705_s1] sm:$0xf]  ;;  %vm181_vm0 = vcmask 1043456   ;;  %s323_s24 = sshll.u32 %s525_s13, 1 }
  0x25   : > { %406 = vset.pattern.permute.xlu0 %v539_v0  ;;  %v179_v2 = vld [vmem:[%s157_s23] sm:$0xf]  ;;  %s220_s6 = sadd.s32 %s521_s12, %s323_s24  ;;  %s178_s22 = scalar_lea.vmem [#allocation5], %s320_s3 }
  0x26   : > { %204 = vperm.xlu0 %406, %v201_v1   ;;  %v180_v3 = vmul.f32 %v179_v2, %v179_v2  ;;  %s324_s7 = sshll.u32 %s220_s6, 2  ;;  %s224_s26 = sshll.u32 %s178_s22, 4  ;;  %s225_s26 = int_to_ptr.vmem [resolvable:$true] %s224_s26 }
  0x27   : > { %s222_s18 = scalar_lea.hbm %s706_s2, %s324_s7  ;;  %s210_s12 = scalar_lea.sflag [#allocation4], %s645_s21 }
  0x28   : > { %v182_v4 = vsel %vm181_vm0, %v180_v3, 0.0  ;;  %s226_s27 = sshll.u32 %s222_s18, 4  ;;  %s459_s5 = scalar_lea.hbm %s706_s2, 16  ;;  %s227_s27 = int_to_ptr.hbm [resolvable:$true] %s226_s27 }
  0x29   : > { %v183_v5 = vrot.slane %v182_v4, 4  ;;  %s453_s13 = sshra.s32 %s227_s27, 4  ;;  %s454_s13 = int_to_ptr.hbm [resolvable:$true] %s453_s13 }
  0x2a   : > { %s455_s4 = scalar_lea.hbm %s454_s13, 4  ;;  %p460_p7 = scmp.lt.s32.totalorder %s454_s13, %s706_s2 }
  0x2b   : > { %v184_v6 = vadd.f32 %v183_v5, %v182_v4  ;;  %p456_p3 = scmp.ne.s32.totalorder %s454_s13, %s455_s4  ;;  %p461_p8 = scmp.lt.s32.totalorder %s459_s5, %s455_s4 }
  0x2d   : > { %v185_v7 = vrot.slane %v184_v6, 2  ;;  %p457_p5 = pnand %p456_p3, %p620_p9  ;;  %p462_p10 = por %p461_p8, %p460_p7 }
  0x2f   : > { %v186_v8 = vadd.f32 %v185_v7, %v184_v6  ;;  %p458_p6 = pneg %p457_p5 }
  0x31   : > { %v187_v9 = vrot.slane %v186_v8, 1  ;;  %p463_p11 = pnand %p462_p10, %p458_p6 }
  0x33   : > { %v188_v10 = vadd.f32 %v187_v9, %v186_v8 }
  0x35   : > { %v189_v11 = vmax.f32 %v188_v10, 1e-24 }
  0x37   : > { %407 = vrsqrt.f32 %v189_v11  ;;  %vm196_vm1 = vweird.f32 %v189_v11 }
  0x3d   : > { %v408_v12 = vpop.eup %407 }
  0x3e   : > { %v191_v13 = vmul.f32 %v408_v12, %v189_v11  ;;  %vm197_vm2 = vweird.f32 %v408_v12 }
  0x3f   : > { %vm198_vm3 = vmor %vm196_vm1, %vm197_vm2 }
  0x40   : > { %v192_v14 = vmul.f32 %v408_v12, %v191_v13 }
  0x42   : > { %v193_v15 = vmul.f32 0.5, %v192_v14 }
  0x44   : > { %v194_v16 = vsub.f32 1.5, %v193_v15 }
  0x46   : > { %v195_v17 = vmul.f32 %v408_v12, %v194_v16 }
  0x48   : > { %v199_v18 = vsel %vm198_vm3, %v408_v12, %v195_v17 }
  0x49   : > { %v200_v19 = vmul.f32 %v199_v18, %v179_v2 }
  0x98   : > { %v205_v20 = vpop.permute.xlu0 %204 }
  0x99   : > { %v207_v21 = vmul.f32 %v205_v20, %v200_v19 }
  0x9b   : > { %208 = vst [vmem:[%s178_s22] sm:$0xf] %v207_v21 }
  0x9c   : > { %466 = shalt.err (!%p463_p11)
}
  0x9d   : > { %329 = dma.vmem_to_hbm [thread:$0]  (%p620_p9), %s225_s26, 64, %s227_s27, %s210_s12  }
  0x9e PF: > { %p340_p13 = scmp.ge.s32.totalorder %s537_s16, 2  ;;  %s238_s21 = sand.u32 1, %s509_s9  }
  0x9f   : > { %s239_s6 = scalar_lea.sflag [#allocation4], %s238_s21 }
  0xa0   : > { %p336_p0 = pnand %p340_p13, %p626_p12 }
  0xa2   : > { %p337_p1 = pneg %p336_p0 }
  0xa4   : > { %504 = dma.done.wait (%p337_p1), %s239_s6, 64  }
  0xa5   : > { %506 = vsyncadd (%p337_p1), %s239_s6, 4294967232  ;;  %s18_s16 = sadd.s32 1, %s537_s16   ;;  %s711_s9 = smov %s513_s10 }
  0xa6   : > { %p15_p2 = scmp.ge.s32.totalorder %s18_s16, 6   ;;  %s712_s10 = smov %s517_s11 }
  0xa7   : > { %s713_s11 = smov %s633_s30  ;;  %s714_s12 = smov %s529_s14 }
  0xa8   : > { %s715_s13 = smov %s533_s15  ;;  %s716_s14 = smov %s719_s19 }
  0xa9   : > { %s717_s15 = smov %s723_s20  ;;  %17 = sbr.rel (!%p15_p2) target bundleno = 7 (0x7), region = 73 }
  0xae   :  { %245 = vsyncpa [#allocation3], 1 }
  0xaf   :  { %247 = vsyncpa [#allocation3 + $0x1], 1 }
  0xb0   :  { %248 = vsyncpa [#allocation4], 1 }
  0xb1   :  { %250 = vsyncpa [#allocation4 + $0x1], 1 }

</bundles_post_ra>
